<compile_context>
chip_gen: v6e
topology: v6e:2x2x1
jax: 0.10.0
libtpu: 0.0.40
codegen_flags: <defaults>
</compile_context>

<pallas_src>
import functools
import math

import jax
import jax.numpy as jnp
from jax.experimental import pallas as pl
from jax.experimental.pallas import tpu as pltpu


_INV_SQRT2 = 1.0 / math.sqrt(2.0)


@functools.lru_cache(maxsize=1)
def _vmem_capacity_bytes():
    try:
        return int(pltpu.get_tpu_info().vmem_capacity_bytes)
    except Exception:
        return 64 * 1024 * 1024  # conservative (v7x per-TC VMEM)


# ----------------------------------------------------------------------------
# Single-pass kernel: whole (TB, C, HW) slab per grid step (x read+written once)
# ----------------------------------------------------------------------------
def _make_se_single_kernel(hw):
    inv_hw = 1.0 / float(hw)

    def kernel(x_ref, w1_ref, w2_ref, o_ref):
        # x_ref: (TB, C, HW) in caller dtype; w1_ref: (C, hid); w2_ref: (hid, C) f32.
        xf = x_ref[...].astype(jnp.float32)                      # (TB, C, HW)
        y = jnp.sum(xf, axis=-1) * inv_hw                        # global avg pool
        h = jnp.dot(y, w1_ref[...], preferred_element_type=jnp.float32)
        h = 0.5 * h * (1.0 + jax.lax.erf(h * _INV_SQRT2))        # exact GELU
        s = jnp.dot(h, w2_ref[...], preferred_element_type=jnp.float32)
        s = 1.0 / (1.0 + jnp.exp(-s))                            # sigmoid (exact)
        o_ref[...] = (xf * s[:, :, None]).astype(o_ref.dtype)

    return kernel


# ----------------------------------------------------------------------------
# Split path for big slabs: (1) pool+FC over HW chunks -> s, (2) scale x by s.
# ----------------------------------------------------------------------------
def _make_pool_fc_kernel(hw, hwc):
    inv_hw = 1.0 / float(hw)
    need_mask = (hw % hwc) != 0

    def kernel(x_ref, w1_ref, w2_ref, s_ref, acc_ref):
        k = pl.program_id(1)

        @pl.when(k == 0)
        def _():
            acc_ref[...] = jnp.zeros_like(acc_ref)

        xf = x_ref[...].astype(jnp.float32)                      # (TBs, C, HWC)
        if need_mask:
            lane = jax.lax.broadcasted_iota(jnp.int32, xf.shape, 2)
            valid = hw - k * hwc
            xf = jnp.where(lane < valid, xf, 0.0)
        acc_ref[...] += jnp.sum(xf, axis=-1)                     # (TBs, C)

        @pl.when(k == pl.num_programs(1) - 1)
        def _():
            y = acc_ref[...] * inv_hw
            h = jnp.dot(y, w1_ref[...], preferred_element_type=jnp.float32)
            h = 0.5 * h * (1.0 + jax.lax.erf(h * _INV_SQRT2))
            s = jnp.dot(h, w2_ref[...], preferred_element_type=jnp.float32)
            s = 1.0 / (1.0 + jnp.exp(-s))
            s_ref[...] = s[:, :, None]                           # (TBs, C, 1)

    return kernel


def _scale_kernel(x_ref, s_ref, o_ref):
    o_ref[...] = (x_ref[...].astype(jnp.float32) * s_ref[...]).astype(o_ref.dtype)


# ----------------------------------------------------------------------------
# Wrapper
# ----------------------------------------------------------------------------
@functools.partial(jax.jit, static_argnames=("force_path", "hw_chunk", "batch_block"))
def se_forward(x, w1, w2, *, force_path=None, hw_chunk=None, batch_block=None):
    """SE forward. x: (B, C, H, W); w1: (hidden, C); w2: (C, hidden) (PyTorch Linear)."""
    B, C, H, W = x.shape
    HW = H * W
    hid = w1.shape[0]
    in_item = jnp.dtype(x.dtype).itemsize

    # No padding, no forced f32 upcast of the activation stream.
    x_flat = x.reshape(B, C, HW)
    w1_t = jnp.asarray(w1, jnp.float32).T      # (C, hid)
    w2_t = jnp.asarray(w2, jnp.float32).T      # (hid, C)
    weight_bytes = 2 * C * hid * 4

    vmem_cap = _vmem_capacity_bytes()
    vmem_ceiling = min(int(vmem_cap * 0.9), 100 << 20)

    # Per-sample VMEM for the single-pass plan:
    #   2x double-buffered input + 2x output blocks (caller dtype) + f32 temps.
    buf_bytes = 4 * C * HW * in_item
    f32_tmp = C * HW * 4 * (2 if in_item < 4 else 1)
    per_sample = buf_bytes + f32_tmp
    usable = int(vmem_cap * 0.75) - 2 * weight_bytes - (4 << 20)
    tb_vmem = usable // per_sample

    if force_path == "split":
        use_split = True
    elif force_path == "single":
        use_split = False
    else:
        use_split = tb_vmem < 1

    if not use_split:
        if batch_block is not None:
            tb = max(1, min(int(batch_block), B))
        else:
            # Keep >= ~8 grid steps when B allows (megacore split + DMA overlap).
            tb = max(1, min(tb_vmem, B, max(1, B // 8)))
        grid = (pl.cdiv(B, tb),)

        vmem_needed = tb * per_sample + 2 * weight_bytes + (4 << 20)
        vmem_limit = int(max(16 << 20, min(vmem_needed, vmem_ceiling)))

        cost = pl.CostEstimate(
            flops=2 * B * C * HW + 4 * B * C * hid,
            transcendentals=B * (hid + C),
            bytes_accessed=2 * B * C * HW * in_item + weight_bytes,
        )

        out_flat = pl.pallas_call(
            _make_se_single_kernel(HW),
            out_shape=jax.ShapeDtypeStruct((B, C, HW), x.dtype),
            grid=grid,
            in_specs=[
                pl.BlockSpec((tb, C, HW), lambda i: (i, 0, 0)),   # streamed x tiles
                pl.BlockSpec((C, hid), lambda i: (0, 0)),         # resident weights
                pl.BlockSpec((hid, C), lambda i: (0, 0)),
            ],
            out_specs=pl.BlockSpec((tb, C, HW), lambda i: (i, 0, 0)),
            compiler_params=pltpu.CompilerParams(
                dimension_semantics=("parallel",),
                vmem_limit_bytes=vmem_limit,
            ),
            cost_estimate=cost,
        )(x_flat, w1_t, w2_t)

    else:
        # HW-chunked split path: keeps VMEM flat regardless of C*HW (v7x 64 MiB).
        if hw_chunk is not None:
            hwc = int(hw_chunk)
        else:
            hwc = (2 << 20) // max(C * in_item, 1)
        if hwc < HW:
            hwc = max(128, (hwc // 128) * 128)   # lane-aligned chunks
        else:
            hwc = HW                              # single full-dim chunk
        n_hw = pl.cdiv(HW, hwc)
        tbs = 1
        grid = (pl.cdiv(B, tbs), n_hw)

        chunk_elems = tbs * C * hwc
        vmem_needed = chunk_elems * (4 * in_item + 8) + 2 * weight_bytes + (4 << 20)
        vmem_limit = int(max(16 << 20, min(vmem_needed, vmem_ceiling)))

        s = pl.pallas_call(
            _make_pool_fc_kernel(HW, hwc),
            out_shape=jax.ShapeDtypeStruct((B, C, 1), jnp.float32),
            grid=grid,
            in_specs=[
                pl.BlockSpec((tbs, C, hwc), lambda i, k: (i, 0, k)),
                pl.BlockSpec((C, hid), lambda i, k: (0, 0)),
                pl.BlockSpec((hid, C), lambda i, k: (0, 0)),
            ],
            out_specs=pl.BlockSpec((tbs, C, 1), lambda i, k: (i, 0, 0)),
            scratch_shapes=[pltpu.VMEM((tbs, C), jnp.float32)],
            compiler_params=pltpu.CompilerParams(
                dimension_semantics=("parallel", "arbitrary"),
                vmem_limit_bytes=vmem_limit,
            ),
        )(x_flat, w1_t, w2_t)

        out_flat = pl.pallas_call(
            _scale_kernel,
            out_shape=jax.ShapeDtypeStruct((B, C, HW), x.dtype),
            grid=grid,
            in_specs=[
                pl.BlockSpec((tbs, C, hwc), lambda i, k: (i, 0, k)),
                pl.BlockSpec((tbs, C, 1), lambda i, k: (i, 0, 0)),
            ],
            out_specs=pl.BlockSpec((tbs, C, hwc), lambda i, k: (i, 0, k)),
            compiler_params=pltpu.CompilerParams(
                dimension_semantics=("parallel", "parallel"),
                vmem_limit_bytes=vmem_limit,
            ),
        )(x_flat, s)

    return out_flat.reshape(B, C, H, W)


def _reference(x, w1, w2):
    # Pure-JAX reference mirroring the PyTorch forward (f32).
    y = jnp.mean(x, axis=(2, 3))
    h = y @ w1.T
    h = 0.5 * h * (1.0 + jax.lax.erf(h / math.sqrt(2.0)))
    s = jax.nn.sigmoid(h @ w2.T)
    return x * s[:, :, None, None]


if __name__ == "__main__":
    def run_case(B, C, H, W, expansion, key, dtype=jnp.float32, **kw):
        hid = max(1, int(C * expansion))
        kx, kw1, kw2 = jax.random.split(key, 3)
        x = jax.random.normal(kx, (B, C, H, W), dtype=jnp.float32).astype(dtype)
        # PyTorch nn.Linear weight layout: (out_features, in_features)
        w1 = jax.random.normal(kw1, (hid, C), dtype=jnp.float32) * 0.1
        w2 = jax.random.normal(kw2, (C, hid), dtype=jnp.float32) * 0.1
        ref = _reference(x.astype(jnp.float32), w1, w2)
        out = jax.block_until_ready(se_forward(x, w1, w2, **kw))
        assert out.shape == (B, C, H, W)
        assert out.dtype == x.dtype
        tol = 1e-5 if dtype == jnp.float32 else 2e-2
        assert jnp.allclose(out.astype(jnp.float32), ref, atol=tol, rtol=tol), "mismatch vs reference"

    key = jax.random.PRNGKey(0)
    ks = jax.random.split(key, 5)

    # SE(inp=32, oup=32, expansion=0.25) -> hidden=8; aligned spatial (16*16=256).
    run_case(2, 32, 16, 16, 0.25, ks[0])
    # Non-multiple-of-128 spatial (7*7=49): full-HW blocks, no pad/slice round trip.
    run_case(4, 32, 7, 7, 0.25, ks[1])
    # bf16 activation streaming (f32 compute inside the kernel).
    run_case(2, 32, 14, 14, 0.25, ks[2], dtype=jnp.bfloat16)
    # Partial final batch block: B=5 with a forced batch block of 2 -> grid=(3,).
    run_case(5, 32, 16, 16, 0.25, ks[3], batch_block=2)
    # Forced split (pool+FC then scale) path with a partial HW chunk (12*12=144, chunk=128).
    run_case(2, 64, 12, 12, 0.25, ks[4], force_path="split", hw_chunk=128)

    print("KERNEL_OK")
</pallas_src>

<mosaic_0001>
module attributes {stable_mosaic.version = 11 : i64} {
  func.func @kernel(%arg0: i32, %arg1: memref<1x32x256xf32, #tpu.memory_space<vmem>>, %arg2: memref<32x8xf32, #tpu.memory_space<vmem>>, %arg3: memref<8x32xf32, #tpu.memory_space<vmem>>, %arg4: memref<1x32x256xf32, #tpu.memory_space<vmem>>) attributes {dimension_semantics = [#tpu.dimension_semantics<parallel>], iteration_bounds = array<i64: 2>, scalar_prefetch = 0 : i64, scratch_operands = 0 : i64, tpu.core_type = #tpu.core_type<tc>, window_params = [{transform_indices = @transform_0, window_bounds = array<i64: 1, 32, 256>}, {pipeline_mode = #tpu.pipeline_mode<synchronous>, transform_indices = @transform_1, window_bounds = array<i64: 32, 8>}, {pipeline_mode = #tpu.pipeline_mode<synchronous>, transform_indices = @transform_2, window_bounds = array<i64: 8, 32>}, {transform_indices = @transform_3, window_bounds = array<i64: 1, 32, 256>}]} {
    %c0 = arith.constant 0 : index
    %c0_0 = arith.constant 0 : index
    %c0_1 = arith.constant 0 : index
    %0 = vector.load %arg1[%c0, %c0_0, %c0_1] : memref<1x32x256xf32, #tpu.memory_space<vmem>>, vector<1x32x256xf32>
    %cst = arith.constant dense<0.000000e+00> : vector<1x32xf32>
    %1 = vector.multi_reduction <add>, %0, %cst [2] : vector<1x32x256xf32> to vector<1x32xf32>
    %cst_2 = arith.constant 3.906250e-03 : f32
    %2 = vector.broadcast %cst_2 : f32 to vector<1x32xf32>
    %3 = arith.mulf %1, %2 : vector<1x32xf32>
    %c0_3 = arith.constant 0 : index
    %c0_4 = arith.constant 0 : index
    %4 = vector.load %arg2[%c0_3, %c0_4] : memref<32x8xf32, #tpu.memory_space<vmem>>, vector<32x8xf32>
    %cst_5 = arith.constant dense<0.000000e+00> : vector<1x8xf32>
    %5 = tpu.matmul %3, %4, %cst_5 {dimension_numbers = #tpu.dot_dimension_numbers<[1], [0], [0], [1], [0, 0, 1, 1], [], []>} : vector<1x32xf32>, vector<32x8xf32>, vector<1x8xf32> -> vector<1x8xf32>
    %cst_6 = arith.constant 5.000000e-01 : f32
    %6 = vector.broadcast %cst_6 : f32 to vector<1x8xf32>
    %7 = arith.mulf %6, %5 : vector<1x8xf32>
    %cst_7 = arith.constant 0.707106769 : f32
    %8 = vector.broadcast %cst_7 : f32 to vector<1x8xf32>
    %9 = arith.mulf %5, %8 : vector<1x8xf32>
    %10 = math.erf %9 : vector<1x8xf32>
    %cst_8 = arith.constant 1.000000e+00 : f32
    %11 = vector.broadcast %cst_8 : f32 to vector<1x8xf32>
    %12 = arith.addf %11, %10 : vector<1x8xf32>
    %13 = arith.mulf %7, %12 : vector<1x8xf32>
    %c0_9 = arith.constant 0 : index
    %c0_10 = arith.constant 0 : index
    %14 = vector.load %arg3[%c0_9, %c0_10] : memref<8x32xf32, #tpu.memory_space<vmem>>, vector<8x32xf32>
    %cst_11 = arith.constant dense<0.000000e+00> : vector<1x32xf32>
    %15 = tpu.matmul %13, %14, %cst_11 {dimension_numbers = #tpu.dot_dimension_numbers<[1], [0], [0], [1], [0, 0, 1, 1], [], []>} : vector<1x8xf32>, vector<8x32xf32>, vector<1x32xf32> -> vector<1x32xf32>
    %cst_12 = arith.constant 0.000000e+00 : f32
    %16 = vector.broadcast %cst_12 : f32 to vector<1x32xf32>
    %17 = arith.subf %16, %15 : vector<1x32xf32>
    %18 = math.exp %17 : vector<1x32xf32>
    %cst_13 = arith.constant 1.000000e+00 : f32
    %19 = vector.broadcast %cst_13 : f32 to vector<1x32xf32>
    %20 = arith.addf %19, %18 : vector<1x32xf32>
    %cst_14 = arith.constant 1.000000e+00 : f32
    %21 = vector.broadcast %cst_14 : f32 to vector<1x32xf32>
    %22 = arith.divf %21, %20 : vector<1x32xf32>
    %23 = vector.shape_cast %22 : vector<1x32xf32> to vector<1x32x1xf32>
    %24 = vector.broadcast %23 : vector<1x32x1xf32> to vector<1x32x256xf32>
    %25 = arith.mulf %0, %24 : vector<1x32x256xf32>
    %c0_15 = arith.constant 0 : index
    %c0_16 = arith.constant 0 : index
    %c0_17 = arith.constant 0 : index
    %26 = vector.load %arg4[%c0_15, %c0_16, %c0_17] : memref<1x32x256xf32, #tpu.memory_space<vmem>>, vector<1x32x256xf32>
    tpu.vector_store %arg4[%c0_15, %c0_16, %c0_17], %25 {strides = array<i32>} : memref<1x32x256xf32, #tpu.memory_space<vmem>>, vector<1x32x256xf32>,
    return
  }
  func.func @transform_0(%arg0: i32) -> (i32, i32, i32) {
    %c0_i32 = arith.constant 0 : i32
    %c0_i32_0 = arith.constant 0 : i32
    %c0_i32_1 = arith.constant 0 : i32
    return %arg0, %c0_i32, %c0_i32_0 : i32, i32, i32
  }
  func.func @transform_1(%arg0: i32) -> (i32, i32) {
    %c0_i32 = arith.constant 0 : i32
    %c0_i32_0 = arith.constant 0 : i32
    %c0_i32_1 = arith.constant 0 : i32
    return %c0_i32, %c0_i32_0 : i32, i32
  }
  func.func @transform_2(%arg0: i32) -> (i32, i32) {
    %c0_i32 = arith.constant 0 : i32
    %c0_i32_0 = arith.constant 0 : i32
    %c0_i32_1 = arith.constant 0 : i32
    return %c0_i32, %c0_i32_0 : i32, i32
  }
  func.func @transform_3(%arg0: i32) -> (i32, i32, i32) {
    %c0_i32 = arith.constant 0 : i32
    %c0_i32_0 = arith.constant 0 : i32
    %c0_i32_1 = arith.constant 0 : i32
    return %arg0, %c0_i32, %c0_i32_0 : i32, i32, i32
  }
}

</mosaic_0001>

<bundles_post_ra>
// kernel: se_forward.1
= control target key start
LH: loop header
LB: loop body
LE: loop exit
PB: predicated region body
PF: predicated region fallthrough
CT: control target
= control target key end

     0   :  { %s563_s12 = smov 0   ;;  %s634_s0 = inlined_call_operand.vmem [shape: f32[2,32,256], index: 0, kind: input, shape index: {}]   ;;  %s635_s1 = inlined_call_operand.vmem [shape: f32[32,8], index: 1, kind: input, shape index: {}]   ;;  %s636_s2 = inlined_call_operand.vmem [shape: f32[8,32], index: 2, kind: input, shape index: {}]   ;;  %s637_s3 = inlined_call_operand.vmem [shape: f32[2,32,256], index: 3, kind: output, shape index: {}]  }
   0x1 LB: > { %s479_s13 = sadd.s32 4294967295, %s539_s12   ;;  %p483_p0 = scmp.ge.s32.totalorder %s539_s12, 1  ;;  %s539_s12 = sphi %s563_s12, %s13_s12  }
   0x2   : > { %p137_p1 = scmp.lt.s32.totalorder %s539_s12, 3 }
   0x4   : > { %p138_p2 = pnand %p483_p0, %p137_p1 }
   0x5   : > { %p161_p3 = scmp.lt.s32.totalorder (!%p138_p2), %s479_s13, 1 }
   0x6   : > { %141 = sbr.rel (%p138_p2) target bundleno = 734 (0x2de), region = 32 }
   0xb   : > { %s639_s13 = smov (!%p161_p3, %s479_s13), 1  ;;  %v541_v12 = vmov 0.0   ;;  %v198_v13 = vld [vmem:[%s635_s1 + $0x18] sm:$0xff]  ;;  %v197_v14 = vld [vmem:[%s635_s1 + $0x10] sm:$0xff]  ;;  %v196_v15 = vld [vmem:[%s635_s1 + $0x8] sm:$0xff]  ;;  %vm542_vm0 = vmmov 0   ;;  %v203_v17 = vlaneseq }
   0xc   : > { %s492_s14 = sshll.u32 %s639_s13, 6  ;;  %501 = vmatprep.subr.mxu0 %v541_v12  ;;  %512 = vmatprep.subr.mxu1 %v541_v12  ;;  %v195_v16 = vld [vmem:[%s635_s1] sm:$0xff]  ;;  %vm214_vm1 = vcmask 130112   ;;  %vm221_vm2 = vcmask 195712   ;;  %vm228_vm3 = vcmask 261312   ;;  %vm230_vm4 = vcmask 261120  }
   0xd   : > { %s165_s17 = scalar_lea.vmem %s634_s0, %s492_s14  ;;  %502 = vmatpush3.msra.mxu0 %v198_v13  ;;  %509 = vmatprep.mubr.msk.f32.mxu0 %vm542_vm0, %v541_v12  ;;  %v204_v18 = vand.u32 127, %v203_v17  ;;  %v206_v19 = vshrl.u32 %v203_v17, 7  ;;  %v308_v42 = vld [vmem:[%s636_s2] sm:$0xff]  ;;  %vm309_vm5 = vcmask 64512   ;;  %s170_s30 = scalar_lea.vmem %s637_s3, %s492_s14 }
   0xe   : > { %v579_v0 = vld [vmem:[%s165_s17] sm:$0xff]  ;;  %v581_v1 = vld [vmem:[%s165_s17 + $0x8] sm:$0xff]  ;;  %v589_v5 = vld [vmem:[%s165_s17 + $0x10] sm:$0xff]  ;;  %503 = vmatprep.subr.mxu0 %v541_v12  ;;  %514 = vmatprep.mubr.msk.f32.mxu1 %vm542_vm0, %v541_v12 }
   0xf   : > { %v583_v2 = vld [vmem:[%s165_s17 + $0x20] sm:$0xff]  ;;  %v179_v3 = vadd.f32 %v581_v1, %v579_v0  ;;  %v587_v4 = vld [vmem:[%s165_s17 + $0x28] sm:$0xff]  ;;  %v591_v6 = vld [vmem:[%s165_s17 + $0x18] sm:$0xff]  ;;  %504 = vmatpush3.msra.mxu0 %v197_v14  ;;  %v209_v20 = vadd.s32 4294967288, %v204_v18  ;;  %v216_v22 = vadd.s32 4294967280, %v204_v18  ;;  %v223_v23 = vadd.s32 4294967272, %v204_v18  ;;  %513 = vmatpush3.msra.mxu1 %v308_v42 }
  0x10   : > { %v185_v7 = vadd.f32 %v587_v4, %v583_v2  ;;  %v595_v8 = vld [vmem:[%s165_s17 + $0x30] sm:$0xff]  ;;  %v597_v9 = vld [vmem:[%s165_s17 + $0x38] sm:$0xff]  ;;  %v182_v10 = vadd.f32 %v591_v6, %v589_v5  ;;  %505 = vmatprep.subr.mxu0 %v541_v12  ;;  %v207_v25 = vsub.s32 %v204_v18, %v206_v19  ;;  %v391_v56 = vsub.s32 0, %v206_v19 }
  0x11   : > { %180 = vadd.xlane.f32.xlu0 %v179_v3  ;;  %v188_v11 = vadd.f32 %v597_v9, %v595_v8  ;;  %506 = vmatpush3.msra.mxu0 %v196_v15  ;;  %v212_v27 = vsub.s32 %v209_v20, %v206_v19  ;;  %v219_v28 = vsub.s32 %v216_v22, %v206_v19 }
  0x12   : > { %186 = vadd.xlane.f32.xlu1 %v185_v7  ;;  %507 = vmatprep.subr.mxu0 %v541_v12  ;;  %v226_v31 = vsub.s32 %v223_v23, %v206_v19 }
  0x13   : > { %508 = vmatpush3.msra.mxu0 %v195_v16 }
  0x15   : > { %183 = vadd.xlane.f32.xlu0 %v182_v10 }
  0x16   : > { %189 = vadd.xlane.f32.xlu1 %v188_v11 }
  0x9a   : > { %v181_v21 = vpop.xlane.xlu0 %180 }
  0x9b   : > { %v187_v24 = vpop.xlane.xlu1 %186  ;;  %v191_v26 = vmul.f32 0.00390625, %v181_v21 }
  0x9c   : > { %v193_v29 = vmul.f32 0.00390625, %v187_v24 }
  0x9d   : > { %v208_v35 = vrot.slane %v191_v26, %v207_v25 }
  0x9e   : > { %v184_v30 = vpop.xlane.xlu0 %183  ;;  %v220_v37 = vrot.slane %v193_v29, %v219_v28 }
  0x9f   : > { %v192_v32 = vmul.f32 0.00390625, %v184_v30  ;;  %v190_v33 = vpop.xlane.xlu1 %189 }
  0xa0   : > { %v194_v34 = vmul.f32 0.00390625, %v190_v33 }
  0xa1   : > { %v213_v36 = vrot.slane %v192_v32, %v212_v27 }
  0xa2   : > { %v227_v38 = vrot.slane %v194_v34, %v226_v31 }
  0xa3   : > { %v215_v39 = vsel %vm214_vm1, %v213_v36, %v208_v35 }
  0xa4   : > { %v222_v40 = vsel %vm221_vm2, %v220_v37, %v215_v39 }
  0xa5   : > { %v229_v41 = vsel %vm228_vm3, %v227_v38, %v222_v40 }
  0xa6   : > { %510 = vmatmul.mubr.msk.f32.vlgmr.msra.gmra.mxu0 %vm230_vm4, %v229_v41 }
 0x166   : > { %v299_v43 = vpop.f32.mrf.mxu0 }
 0x167   : > { %v304_v44 = vmul.f32 0.70710677, %v299_v43  ;;  %v303_v47 = vmul.f32 0.5, %v299_v43 }
 0x168   : > { %v511_v45 = vpop.f32.mrf.mxu0 }
 0x169   : > { %527 = verf.f32 %v304_v44 }
 0x176   : > { %v528_v46 = vpop.eup %527 }
 0x177   : > { %v306_v48 = vadd.f32 1.0, %v528_v46 }
 0x179   : > { %v307_v49 = vmul.f32 %v306_v48, %v303_v47 }
 0x17b   : > { %515 = vmatmul.mubr.msk.f32.vlgmr.msra.gmra.mxu1 %vm309_vm5, %v307_v49 }
 0x23b   : > { %v379_v50 = vpop.f32.mrf.mxu1 }
 0x23c   : > { %v383_v51 = vsub.f32 0.0, %v379_v50 }
 0x23d   : > { %v516_v52 = vpop.f32.mrf.mxu1 }
 0x23e   : > { %v384_v53 = vmul.f32 1.442695, %v383_v51 }
 0x240   : > { %529 = vpow2.f32 %v384_v53 }
 0x24d   : > { %v530_v54 = vpop.eup %529 }
 0x24e   : > { %v386_v55 = vadd.f32 1.0, %v530_v54 }
 0x250   : > { %531 = vrcp.f32 %v386_v55 }
 0x25d   : > { %v532_v57 = vpop.eup %531 }
 0x25e   : > { %v392_v58 = vrot.slane %v532_v57, %v391_v56 }
 0x260   : > { %398 = vbcast.lane.b32.xlu1 %v392_v58, 264  ;;  %394 = vbcast.lane.b32.xlu0 %v392_v58, 256 }
 0x264   : > { %402 = vbcast.lane.b32.xlu1 %v392_v58, 272 }
 0x268   : > { %406 = vbcast.lane.b32.xlu1 %v392_v58, 280 }
 0x2d2   : > { %v399_v59 = vpop.permute.xlu1 %398  ;;  %v395_v60 = vpop.permute.xlu0 %394 }
 0x2d3   : > { %v410_v61 = vmul.f32 %v399_v59, %v589_v5  ;;  %v411_v62 = vmul.f32 %v399_v59, %v591_v6  ;;  %v408_v63 = vmul.f32 %v395_v60, %v579_v0  ;;  %v409_v3 = vmul.f32 %v395_v60, %v581_v1 }
 0x2d5   : > { %418 = vst [vmem:[%s170_s30 + $0x10] sm:$0xff] %v410_v61  ;;  %419 = vst [vmem:[%s170_s30 + $0x18] sm:$0xff] %v411_v62 }
 0x2d6   : > { %416 = vst [vmem:[%s170_s30] sm:$0xff] %v408_v63  ;;  %417 = vst [vmem:[%s170_s30 + $0x8] sm:$0xff] %v409_v3  ;;  %v403_v7 = vpop.permute.xlu1 %402 }
 0x2d7   : > { %v412_v10 = vmul.f32 %v403_v7, %v583_v2  ;;  %v413_v11 = vmul.f32 %v403_v7, %v587_v4 }
 0x2d9   : > { %420 = vst [vmem:[%s170_s30 + $0x20] sm:$0xff] %v412_v10  ;;  %421 = vst [vmem:[%s170_s30 + $0x28] sm:$0xff] %v413_v11 }
 0x2da   : > { %v407_v12 = vpop.permute.xlu1 %406 }
 0x2db   : > { %v414_v5 = vmul.f32 %v407_v12, %v595_v8  ;;  %v415_v6 = vmul.f32 %v407_v12, %v597_v9 }
 0x2dd   : > { %422 = vst [vmem:[%s170_s30 + $0x30] sm:$0xff] %v414_v5  ;;  %423 = vst [vmem:[%s170_s30 + $0x38] sm:$0xff] %v415_v6 }
 0x2de PF: > { %s13_s12 = sadd.s32 1, %s539_s12  }
 0x2df   : > { %p10_p4 = scmp.ge.s32.totalorder %s13_s12, 4  }
 0x2e1   :  { %12 = sbr.rel (!%p10_p4) target bundleno = 1 (0x1), region = 62 }

</bundles_post_ra>
